<compile_context>
chip_gen: v7x
topology: tpu7x:2x2x1
jax: 0.10.0
libtpu: 0.0.40
codegen_flags: <defaults>
</compile_context>

<pallas_src>
import functools
import math

import jax
import jax.numpy as jnp
from jax.experimental import pallas as pl
from jax.experimental.pallas import tpu as pltpu


def _round_up(x, m):
    return ((x + m - 1) // m) * m


def _make_mlp_kernel(n_hidden, compute_dtype):
    """Fused MLP kernel: n_hidden x (Linear+ReLU) then Linear(->1), one tile of rows."""

    def kernel(*refs):
        x_ref = refs[0]
        out_ref = refs[-1]
        prefs = refs[1:-1]              # w0,b0, w1,b1, ..., w_out_T, b_out
        h = x_ref[...]                  # (TILE_R, d_in) f32
        for l in range(n_hidden):
            w = prefs[2 * l][...]       # (in, out)
            b = prefs[2 * l + 1][...]   # (1, out)
            h = jnp.dot(h.astype(compute_dtype), w.astype(compute_dtype),
                        preferred_element_type=jnp.float32) + b
            h = jnp.maximum(h, 0.0)     # ReLU, f32 epilogue
        w_out_t = prefs[-2][...]        # (1, H_last)  -- PyTorch (out,in) layout
        b_out = prefs[-1][...]          # (1, 1)
        # (1,H) . (TILE_R,H)^T -> (1, TILE_R): lane-dense output slab (f32).
        v = jax.lax.dot_general(
            w_out_t, h,
            dimension_numbers=(((1,), (1,)), ((), ())),
            preferred_element_type=jnp.float32) + b_out
        out_ref[...] = v[None]          # (1, 1, TILE_R)

    return kernel


@functools.partial(jax.jit, static_argnames=("block_rows", "compute_dtype"))
def attention_criticnet_forward(x, params, *, block_rows=256,
                                compute_dtype=jnp.bfloat16):
    """x: (..., d_in).  params: (w0,b0, w1,b1, ..., w_out_T, b_out) with
    hidden weights stored (in,out), biases (1,out), final weight (1,H_last),
    final bias (1,1).  Returns (..., 1) float32 critic values."""
    lead = x.shape[:-1]
    d_in = x.shape[-1]
    rows = math.prod(lead)
    x2 = x.reshape(rows, d_in).astype(jnp.float32)

    # Row tile: multiple of 8 sublanes, <= block_rows; pad rows to a multiple.
    tile = _round_up(min(block_rows, _round_up(rows, 8)), 8)
    rows_pad = _round_up(rows, tile)
    if rows_pad != rows:
        x2 = jnp.pad(x2, ((0, rows_pad - rows), (0, 0)))
    num_tiles = rows_pad // tile

    n_hidden = (len(params) - 2) // 2
    kernel = _make_mlp_kernel(n_hidden, compute_dtype)

    in_specs = [pl.BlockSpec((tile, d_in), lambda i: (i, 0))]
    for p in params:
        # Full-array blocks with constant index maps -> VMEM-resident weights.
        in_specs.append(pl.BlockSpec(p.shape, lambda i: (0, 0)))
    out_spec = pl.BlockSpec((1, 1, tile), lambda i: (i, 0, 0))

    # Advisory cost estimate.
    flops = 0
    prev = d_in
    for l in range(n_hidden):
        h = params[2 * l].shape[1]
        flops += 2 * rows_pad * prev * h
        prev = h
    flops += 2 * rows_pad * prev * 1
    bytes_accessed = 4 * (x2.size + sum(int(p.size) for p in params) + rows_pad)

    out = pl.pallas_call(
        kernel,
        out_shape=jax.ShapeDtypeStruct((num_tiles, 1, tile), jnp.float32),
        grid=(num_tiles,),
        in_specs=in_specs,
        out_specs=out_spec,
        compiler_params=pltpu.CompilerParams(
            dimension_semantics=("parallel",)),
        cost_estimate=pl.CostEstimate(
            flops=flops, transcendentals=0, bytes_accessed=bytes_accessed),
    )(x2, *params)

    return out.reshape(rows_pad)[:rows].reshape(*lead, 1)


def init_critic_params(key, input_dim, hidden_sizes):
    """PyTorch-Linear-style uniform init.  Hidden weights stored (in,out); the
    final layer weight is stored in PyTorch (out,in)=(1,H_last) layout so the
    kernel can emit a lane-dense (1, TILE_R) output directly."""
    dims = [input_dim] + list(hidden_sizes)
    params = []
    for i in range(len(dims) - 1):
        fan_in, fan_out = dims[i], dims[i + 1]
        key, kw, kb = jax.random.split(key, 3)
        bound = 1.0 / math.sqrt(fan_in)
        params.append(jax.random.uniform(kw, (fan_in, fan_out), jnp.float32,
                                         -bound, bound))
        params.append(jax.random.uniform(kb, (1, fan_out), jnp.float32,
                                         -bound, bound))
    fan_in = dims[-1]
    key, kw, kb = jax.random.split(key, 3)
    bound = 1.0 / math.sqrt(fan_in)
    params.append(jax.random.uniform(kw, (1, fan_in), jnp.float32, -bound, bound))
    params.append(jax.random.uniform(kb, (1, 1), jnp.float32, -bound, bound))
    return tuple(params)


if __name__ == "__main__":
    # Attention_CriticNet(independent=True): input = state_dim + action_dim + n_agents
    state_dim, action_dim, n_agents = 28, 8, 4
    input_dim = state_dim + action_dim + n_agents          # 40
    hidden_sizes = (32, 32)
    batch = 15                                             # rows = 60 -> 2 tiles of 32 + tail padding

    key = jax.random.PRNGKey(0)
    kx, kp = jax.random.split(key)
    x = jax.random.normal(kx, (batch, n_agents, input_dim), jnp.float32)
    params = init_critic_params(kp, input_dim, hidden_sizes)

    out = attention_criticnet_forward(x, params, block_rows=32,
                                      compute_dtype=jnp.bfloat16)
    jax.block_until_ready(out)
    assert out.shape == (batch, n_agents, 1)

    # Reference 1: same arithmetic as the kernel (bf16 hidden matmuls, f32 acc).
    w0, b0, w1, b1, wo, bo = params
    cd = jnp.bfloat16
    xr = x.reshape(-1, input_dim)
    h = jnp.maximum(jnp.dot(xr.astype(cd), w0.astype(cd),
                            preferred_element_type=jnp.float32) + b0, 0.0)
    h = jnp.maximum(jnp.dot(h.astype(cd), w1.astype(cd),
                            preferred_element_type=jnp.float32) + b1, 0.0)
    ref = (jnp.dot(h, wo.T, preferred_element_type=jnp.float32) + bo)
    ref = ref.reshape(batch, n_agents, 1)
    assert jnp.allclose(ref, out, atol=1e-3, rtol=1e-3), "critic value mismatch"

    # Reference 2: pure-f32 forward (coarse sanity on bf16 matmul error).
    hf = jnp.maximum(xr @ w0 + b0, 0.0)
    hf = jnp.maximum(hf @ w1 + b1, 0.0)
    ref32 = (hf @ wo.T + bo).reshape(batch, n_agents, 1)
    assert jnp.allclose(ref32, out, atol=5e-2, rtol=5e-2), "f32 sanity mismatch"

    print("KERNEL_OK")
</pallas_src>

<mosaic_0001>
module attributes {stable_mosaic.version = 11 : i64} {
  func.func @kernel(%arg0: i32, %arg1: memref<32x40xf32, #tpu.memory_space<vmem>>, %arg2: memref<40x32xf32, #tpu.memory_space<vmem>>, %arg3: memref<1x32xf32, #tpu.memory_space<vmem>>, %arg4: memref<32x32xf32, #tpu.memory_space<vmem>>, %arg5: memref<1x32xf32, #tpu.memory_space<vmem>>, %arg6: memref<1x32xf32, #tpu.memory_space<vmem>>, %arg7: memref<1x1xf32, #tpu.memory_space<vmem>>, %arg8: memref<1x1x32xf32, #tpu.memory_space<vmem>>) attributes {dimension_semantics = [#tpu.dimension_semantics<parallel>], iteration_bounds = array<i64: 2>, scalar_prefetch = 0 : i64, scratch_operands = 0 : i64, tpu.core_type = #tpu.core_type<tc>, window_params = [{transform_indices = @transform_0, window_bounds = array<i64: 32, 40>}, {pipeline_mode = #tpu.pipeline_mode<synchronous>, transform_indices = @transform_1, window_bounds = array<i64: 40, 32>}, {pipeline_mode = #tpu.pipeline_mode<synchronous>, transform_indices = @transform_2, window_bounds = array<i64: 1, 32>}, {pipeline_mode = #tpu.pipeline_mode<synchronous>, transform_indices = @transform_3, window_bounds = array<i64: 32, 32>}, {pipeline_mode = #tpu.pipeline_mode<synchronous>, transform_indices = @transform_4, window_bounds = array<i64: 1, 32>}, {pipeline_mode = #tpu.pipeline_mode<synchronous>, transform_indices = @transform_5, window_bounds = array<i64: 1, 32>}, {pipeline_mode = #tpu.pipeline_mode<synchronous>, transform_indices = @transform_6, window_bounds = array<i64: 1, 1>}, {transform_indices = @transform_7, window_bounds = array<i64: 1, 1, 32>}]} {
    %c0 = arith.constant 0 : index
    %c0_0 = arith.constant 0 : index
    %0 = vector.load %arg1[%c0, %c0_0] : memref<32x40xf32, #tpu.memory_space<vmem>>, vector<32x40xf32>
    %c0_1 = arith.constant 0 : index
    %c0_2 = arith.constant 0 : index
    %1 = vector.load %arg2[%c0_1, %c0_2] : memref<40x32xf32, #tpu.memory_space<vmem>>, vector<40x32xf32>
    %c0_3 = arith.constant 0 : index
    %c0_4 = arith.constant 0 : index
    %2 = vector.load %arg3[%c0_3, %c0_4] : memref<1x32xf32, #tpu.memory_space<vmem>>, vector<1x32xf32>
    %3 = arith.truncf %0 : vector<32x40xf32> to vector<32x40xbf16>
    %4 = arith.truncf %1 : vector<40x32xf32> to vector<40x32xbf16>
    %cst = arith.constant dense<0.000000e+00> : vector<32x32xf32>
    %5 = tpu.matmul %3, %4, %cst {dimension_numbers = #tpu.dot_dimension_numbers<[1], [0], [0], [1], [0, 0, 1, 1], [], []>} : vector<32x40xbf16>, vector<40x32xbf16>, vector<32x32xf32> -> vector<32x32xf32>
    %6 = vector.broadcast %2 : vector<1x32xf32> to vector<32x32xf32>
    %7 = arith.addf %5, %6 : vector<32x32xf32>
    %cst_5 = arith.constant 0.000000e+00 : f32
    %8 = vector.broadcast %cst_5 : f32 to vector<32x32xf32>
    %9 = arith.maximumf %7, %8 : vector<32x32xf32>
    %c0_6 = arith.constant 0 : index
    %c0_7 = arith.constant 0 : index
    %10 = vector.load %arg4[%c0_6, %c0_7] : memref<32x32xf32, #tpu.memory_space<vmem>>, vector<32x32xf32>
    %c0_8 = arith.constant 0 : index
    %c0_9 = arith.constant 0 : index
    %11 = vector.load %arg5[%c0_8, %c0_9] : memref<1x32xf32, #tpu.memory_space<vmem>>, vector<1x32xf32>
    %12 = arith.truncf %9 : vector<32x32xf32> to vector<32x32xbf16>
    %13 = arith.truncf %10 : vector<32x32xf32> to vector<32x32xbf16>
    %cst_10 = arith.constant dense<0.000000e+00> : vector<32x32xf32>
    %14 = tpu.matmul %12, %13, %cst_10 {dimension_numbers = #tpu.dot_dimension_numbers<[1], [0], [0], [1], [0, 0, 1, 1], [], []>} : vector<32x32xbf16>, vector<32x32xbf16>, vector<32x32xf32> -> vector<32x32xf32>
    %15 = vector.broadcast %11 : vector<1x32xf32> to vector<32x32xf32>
    %16 = arith.addf %14, %15 : vector<32x32xf32>
    %cst_11 = arith.constant 0.000000e+00 : f32
    %17 = vector.broadcast %cst_11 : f32 to vector<32x32xf32>
    %18 = arith.maximumf %16, %17 : vector<32x32xf32>
    %c0_12 = arith.constant 0 : index
    %c0_13 = arith.constant 0 : index
    %19 = vector.load %arg6[%c0_12, %c0_13] : memref<1x32xf32, #tpu.memory_space<vmem>>, vector<1x32xf32>
    %c0_14 = arith.constant 0 : index
    %c0_15 = arith.constant 0 : index
    %20 = vector.load %arg7[%c0_14, %c0_15] : memref<1x1xf32, #tpu.memory_space<vmem>>, vector<1x1xf32>
    %cst_16 = arith.constant dense<0.000000e+00> : vector<1x32xf32>
    %21 = tpu.matmul %19, %18, %cst_16 {dimension_numbers = #tpu.dot_dimension_numbers<[1], [1], [0], [0], [0, 0, 1, 0], [], []>} : vector<1x32xf32>, vector<32x32xf32>, vector<1x32xf32> -> vector<1x32xf32>
    %22 = vector.broadcast %20 : vector<1x1xf32> to vector<1x32xf32>
    %23 = arith.addf %21, %22 : vector<1x32xf32>
    %24 = vector.shape_cast %23 : vector<1x32xf32> to vector<1x1x32xf32>
    %c0_17 = arith.constant 0 : index
    %c0_18 = arith.constant 0 : index
    %c0_19 = arith.constant 0 : index
    %25 = vector.load %arg8[%c0_17, %c0_18, %c0_19] : memref<1x1x32xf32, #tpu.memory_space<vmem>>, vector<1x1x32xf32>
    tpu.vector_store %arg8[%c0_17, %c0_18, %c0_19], %24 {strides = array<i32>} : memref<1x1x32xf32, #tpu.memory_space<vmem>>, vector<1x1x32xf32>,
    return
  }
  func.func @transform_0(%arg0: i32) -> (i32, i32) {
    %c0_i32 = arith.constant 0 : i32
    %c0_i32_0 = arith.constant 0 : i32
    return %arg0, %c0_i32 : i32, i32
  }
  func.func @transform_1(%arg0: i32) -> (i32, i32) {
    %c0_i32 = arith.constant 0 : i32
    %c0_i32_0 = arith.constant 0 : i32
    %c0_i32_1 = arith.constant 0 : i32
    return %c0_i32, %c0_i32_0 : i32, i32
  }
  func.func @transform_2(%arg0: i32) -> (i32, i32) {
    %c0_i32 = arith.constant 0 : i32
    %c0_i32_0 = arith.constant 0 : i32
    %c0_i32_1 = arith.constant 0 : i32
    return %c0_i32, %c0_i32_0 : i32, i32
  }
  func.func @transform_3(%arg0: i32) -> (i32, i32) {
    %c0_i32 = arith.constant 0 : i32
    %c0_i32_0 = arith.constant 0 : i32
    %c0_i32_1 = arith.constant 0 : i32
    return %c0_i32, %c0_i32_0 : i32, i32
  }
  func.func @transform_4(%arg0: i32) -> (i32, i32) {
    %c0_i32 = arith.constant 0 : i32
    %c0_i32_0 = arith.constant 0 : i32
    %c0_i32_1 = arith.constant 0 : i32
    return %c0_i32, %c0_i32_0 : i32, i32
  }
  func.func @transform_5(%arg0: i32) -> (i32, i32) {
    %c0_i32 = arith.constant 0 : i32
    %c0_i32_0 = arith.constant 0 : i32
    %c0_i32_1 = arith.constant 0 : i32
    return %c0_i32, %c0_i32_0 : i32, i32
  }
  func.func @transform_6(%arg0: i32) -> (i32, i32) {
    %c0_i32 = arith.constant 0 : i32
    %c0_i32_0 = arith.constant 0 : i32
    %c0_i32_1 = arith.constant 0 : i32
    return %c0_i32, %c0_i32_0 : i32, i32
  }
  func.func @transform_7(%arg0: i32) -> (i32, i32, i32) {
    %c0_i32 = arith.constant 0 : i32
    %c0_i32_0 = arith.constant 0 : i32
    %c0_i32_1 = arith.constant 0 : i32
    return %arg0, %c0_i32, %c0_i32_0 : i32, i32, i32
  }
}

</mosaic_0001>

<bundles_post_ra>
// kernel: attention_criticnet_forward.1
= control target key start
LH: loop header
LB: loop body
LE: loop exit
PB: predicated region body
PF: predicated region fallthrough
CT: control target
= control target key end

     0   :  { %s725_s26 = smov 0   ;;  %s788_s0 = inlined_call_operand.vmem [shape: f32[64,40], index: 0, kind: input, shape index: {}]   ;;  %s789_s1 = inlined_call_operand.vmem [shape: f32[40,32], index: 1, kind: input, shape index: {}]   ;;  %s790_s2 = inlined_call_operand.vmem [shape: f32[1,32], index: 2, kind: input, shape index: {}]   ;;  %s791_s3 = inlined_call_operand.vmem [shape: f32[32,32], index: 3, kind: input, shape index: {}]   ;;  %s792_s4 = inlined_call_operand.vmem [shape: f32[1,32], index: 4, kind: input, shape index: {}]   ;;  %s793_s5 = inlined_call_operand.vmem [shape: f32[1,32], index: 5, kind: input, shape index: {}]   ;;  %s794_s6 = inlined_call_operand.<no memory space> [shape: f32[1,1], index: 6, kind: input, shape index: {}]   ;;  %s795_s7 = inlined_call_operand.vmem [shape: f32[2,1,32], index: 7, kind: output, shape index: {}]  }
   0x1   :  { %v12_v0 = vstv %s794_s6 }
   0x2   :  { %13 = vst [vmem:[#allocation2] sm:$0x1] %v12_v0 }
   0x3 LB: > { %s731_s27 = sadd.s32 4294967295, %s676_s26   ;;  %p589_p0 = scmp.ge.s32.totalorder %s676_s26, 1  ;;  %s676_s26 = sphi %s725_s26, %s19_s26  }
   0x4   : > { %p240_p1 = scmp.lt.s32.totalorder %s676_s26, 3 }
   0x6   : > { %p241_p2 = pnand %p589_p0, %p240_p1 }
   0x7   : > { %v284_v1 = vld [vmem:[%s789_s1] sm:$0xff] (!%p241_p2)  ;;  %v285_v2 = vld [vmem:[%s789_s1 + $0x8] sm:$0xff] (!%p241_p2)  ;;  %v286_v3 = vld [vmem:[%s789_s1 + $0x10] sm:$0xff] (!%p241_p2)  ;;  %s590_s10 = sshll.u32 (!%p241_p2), %s731_s27, 2  ;;  %vm308_vm0 = vcmask (!%p241_p2), 1043456   ;;  %vm301_vm1 = vcmask (!%p241_p2), 326656   ;;  %v447_v57 = vlaneseq (!%p241_p2) }
   0x8   : > { %244 = sbr.rel (%p241_p2) target bundleno = 695 (0x2b7), region = 48  ;;  %v292_v4 = vpack.c.bf16 (!%p241_p2), %v285_v2, %v284_v1  ;;  %v287_v5 = vld [vmem:[%s789_s1 + $0x18] sm:$0xff] (!%p241_p2)  ;;  %p271_p3 = scmp.lt.s32.totalorder (!%p241_p2), %s590_s10, 7  ;;  %v288_v7 = vld [vmem:[%s789_s1 + $0x20] sm:$0xff] (!%p241_p2)  ;;  %v366_v17 = vld [vmem:[%s791_s3 + $0x8] sm:$0xff] (!%p241_p2)  ;;  %vm380_vm2 = vcmask (!%p241_p2), 261120  }
   0x9   : > { %v293_v6 = vpack.c.bf16 (!%p241_p2), %v287_v5, %v286_v3  ;;  %v294_v8 = vpack.c.bf16 (!%p241_p2), %v288_v7, %v288_v7  ;;  %v365_v16 = vld [vmem:[%s791_s3] sm:$0xff] (!%p241_p2)  ;;  %v367_v19 = vld [vmem:[%s791_s3 + $0x10] sm:$0xff] (!%p241_p2)  ;;  %v368_v20 = vld [vmem:[%s791_s3 + $0x18] sm:$0xff] (!%p241_p2)  ;;  %v678_v37 = vmov (!%p241_p2), 0.0|0.0   ;;  %vm679_vm3 = vmmov (!%p241_p2), 0   ;;  %p276_p4 = scmp.lt.s32.totalorder (!%p241_p2), %s731_s27, 1 }
   0xa   : > { %619 = vmatprep.subr.bf16.mxu0 (!%p241_p2), %v292_v4  ;;  %v372_v18 = vpack.c.bf16 (!%p241_p2), %v366_v17, %v365_v16  ;;  %v373_v21 = vpack.c.bf16 (!%p241_p2), %v368_v20, %v367_v19  ;;  %v592_v22 = vld [vmem:[%s790_s2] ss:$0 sm:$0xff] (!%p241_p2)  ;;  %v680_v38 = vmov (!%p241_p2), 0.0   ;;  %v681_v40 = vmov (!%p241_p2), 0   ;;  %vm650_vm4 = vmpackc.low (!%p241_p2), %vm380_vm2, %vm380_vm2 }
   0xb   : > { %620 = vmatpush3.bf16.msra.mxu0 (!%p241_p2), %v292_v4  ;;  %v310_v14 = vsel (!%p241_p2), %vm308_vm0, %v294_v8, 0  ;;  %v441_v39 = vld [vmem:[#allocation2] sm:$0x1] (!%p241_p2)  ;;  %669 = vset.pattern.permute.xlu0 (!%p241_p2), %v681_v40  ;;  %v448_v58 = vshrl.u32 (!%p241_p2), %v447_v57, 7  ;;  %vm536_vm5 = vcmask (!%p241_p2), 253952  }
   0xc   : > { %621 = vmatprep.subr.bf16.mxu0 (!%p241_p2), %v293_v6  ;;  %629 = vmatprep.subr.bf16.mxu1 (!%p241_p2), %v372_v18  ;;  %v595_v41 = vld [vmem:[%s792_s4] ss:$0 sm:$0xff] (!%p241_p2) }
   0xd   : > { %630 = vmatpush3.bf16.msra.mxu1 (!%p241_p2), %v372_v18  ;;  %444 = vperm.xlu0 (!%p241_p2), %669, %v441_v39   ;;  %v440_v56 = vld [vmem:[%s793_s5] sm:$0x1] (!%p241_p2)  ;;  %v449_v59 = vsub.s32 (!%p241_p2), 0, %v448_v58 }
   0xe   : > { %631 = vmatprep.subr.bf16.mxu1 (!%p241_p2), %v373_v21 }
   0xf   : > { %s797_s10 = smov (!%p271_p3, %s590_s10), 7  ;;  %622 = vmatpush3.bf16.msra.mxu0 %v293_v6  ;;  %s799_s27 = smov (!%p276_p4, %s731_s27), 1 }
  0x10   : > { %s591_s15 = sshll.u32 %s797_s10, 3  ;;  %656 = vmatprep.subr.msk.bf16.mxu0 %vm308_vm0, %v294_v8  ;;  %s278_s13 = scalar_lea.vmem %s795_s7, %s799_s27 }
  0x11   : > { %s274_s18 = scalar_lea.vmem %s788_s0, %s591_s15  ;;  %632 = vmatpush3.bf16.msra.mxu1 %v373_v21 }
  0x12   : > { %v280_v9 = vld [vmem:[%s274_s18] sm:$0xff]  ;;  %v281_v10 = vld [vmem:[%s274_s18 + $0x8] sm:$0xff]  ;;  %v282_v12 = vld [vmem:[%s274_s18 + $0x10] sm:$0xff]  ;;  %648 = vmatprep.subr.bf16.mxu1 %v678_v37 }
  0x13   : > { %v290_v11 = vpack.c.bf16 %v281_v10, %v280_v9  ;;  %v283_v13 = vld [vmem:[%s274_s18 + $0x18] sm:$0xff]  ;;  %624 = vmatpush3.bf16.msra.mxu0 %v310_v14 }
  0x14   : > { %v291_v15 = vpack.c.bf16 %v283_v13, %v282_v12 }
  0x15   : > { %625 = vmatprep.mubr.msk.bf16.mxu0 %vm301_vm1, %v290_v11 }
  0x16   : > { %626 = vmatmul.mubr.msk.bf16.vlgmr.msra.gmra.mrb[0].mxu0 %vm301_vm1, %v291_v15 }
  0x8c   : > { %v445_v60 = vpop.permute.xlu0 %444 }
  0x8d   : > { %v450_v61 = vrot.slane %v445_v60, %v449_v59 }
  0xe9   : > { %v627_v23 = vpop.f32.mrb[0].mxu0 }
  0xea   : > { %v355_v24 = vadd.f32 %v627_v23, %v592_v22  ;;  %v346_v25 = vpop.f32.mrb[1].mxu0 }
  0xeb   : > { %v347_v26 = vadd.f32 %v592_v22, %v346_v25  ;;  %v628_v27 = vpop.f32.mrb[2].mxu0 }
  0xec   : > { %v358_v28 = vadd.f32 %v628_v27, %v592_v22  ;;  %v349_v29 = vpop.f32.mrb[3].mxu0  ;;  %v363_v31 = vmax.f32 %v355_v24, 0.0 }
  0xed   : > { %v350_v30 = vadd.f32 %v592_v22, %v349_v29  ;;  %v361_v33 = vmax.f32 %v347_v26, 0.0 }
  0xee   : > { %v364_v32 = vmax.f32 %v358_v28, 0.0 }
  0xef   : > { %v362_v34 = vmax.f32 %v350_v30, 0.0 }
  0xf0   : > { %v371_v35 = vpack.c.bf16 %v364_v32, %v363_v31 }
  0xf1   : > { %v370_v36 = vpack.c.bf16 %v362_v34, %v361_v33 }
  0xf3   : > { %633 = vmatprep.mubr.msk.bf16.mxu1 %vm380_vm2, %v370_v36 }
  0xf4   : > { %634 = vmatmul.mubr.msk.bf16.vlgmr.msra.gmra.mrb[0].mxu1 %vm380_vm2, %v371_v35 }
  0xf5   : > { %645 = vmatprep.mubr.msk.f32.mxu1 %vm679_vm3, %v680_v38 }
 0x1c7   : > { %v635_v42 = vpop.f32.mrb[0].mxu1 }
 0x1c8   : > { %v430_v43 = vadd.f32 %v635_v42, %v595_v41  ;;  %v421_v44 = vpop.f32.mrb[1].mxu1 }
 0x1c9   : > { %v422_v45 = vadd.f32 %v595_v41, %v421_v44  ;;  %v636_v46 = vpop.f32.mrb[2].mxu1 }
 0x1ca   : > { %v433_v47 = vadd.f32 %v636_v46, %v595_v41  ;;  %v424_v48 = vpop.f32.mrb[3].mxu1  ;;  %v438_v50 = vmax.f32 %v430_v43, 0.0 }
 0x1cb   : > { %v425_v49 = vadd.f32 %v595_v41, %v424_v48  ;;  %v436_v52 = vmax.f32 %v422_v45, 0.0 }
 0x1cc   : > { %v439_v51 = vmax.f32 %v433_v47, 0.0 }
 0x1cd   : > { %v437_v53 = vmax.f32 %v425_v49, 0.0 }
 0x1ce   : > { %v653_v54 = vpack.c.bf16 %v439_v51, %v438_v50 }
 0x1cf   : > { %v649_v55 = vpack.c.bf16 %v437_v53, %v436_v52 }
 0x1d1   : > { %651 = vmatpush3.bf16.xpose.msk.msra.mxu1 %vm650_vm4, %v649_v55 }
 0x1d2   : > { %652 = vmatprep.subr.bf16.mxu1 %v678_v37 }
 0x1d9   : > { %655 = vmatpush3.bf16.xpose.msk.msra.mxu1 %vm650_vm4, %v653_v54 }
 0x1e0   : > { %646 = vmatmul.mubr.msk.f32.vlgmr.msra.gmra.mrb[4].mxu1 %vm380_vm2, %v440_v56 }
 0x2b3   : > { %v532_v62 = vpop.f32.mrb[4].mxu1 }
 0x2b4   : > { %v533_v63 = vadd.f32 %v532_v62, %v450_v61  ;;  %v647_v0 = vpop.f32.mrb[5].mxu1 }
 0x2b6   : > { %537 = vst.msk [vmem:[%s278_s13] sm:$0x1] %vm536_vm5, %v533_v63 }
 0x2b7 PF: > { %s19_s26 = sadd.s32 1, %s676_s26  }
 0x2b8   : > { %p16_p5 = scmp.ge.s32.totalorder %s19_s26, 4  }
 0x2ba   :  { %18 = sbr.rel (!%p16_p5) target bundleno = 3 (0x3), region = 78 }

</bundles_post_ra>
